<compile_context>
chip_gen: v6e
topology: v6e:2x2x1
jax: 0.10.0
libtpu: 0.0.40
codegen_flags: <defaults>
</compile_context>

<pallas_src>
import functools

import jax
import jax.numpy as jnp
from jax.experimental import pallas as pl
from jax.experimental.pallas import tpu as pltpu

# Standard YOLOv1 architecture config used by the reference implementation.
architecture_config = [
    (7, 64, 2, 3),
    "M",
    (3, 192, 1, 1),
    "M",
    (1, 128, 1, 0),
    (3, 256, 1, 1),
    (1, 256, 1, 0),
    (3, 512, 1, 1),
    "M",
    [(1, 256, 1, 0), (3, 512, 1, 1), 4],
    (1, 512, 1, 0),
    (3, 1024, 1, 1),
    "M",
    [(1, 512, 1, 0), (3, 1024, 1, 1), 2],
    (3, 1024, 1, 1),
    (3, 1024, 2, 1),
    (3, 1024, 1, 1),
    (3, 1024, 1, 1),
]

LEAKY_SLOPE = 0.1
BN_EPS = 1e-5


def _round_up(v, m):
    return ((v + m - 1) // m) * m


# ---------------------------------------------------------------------------
# Fused matmul kernel: out = act((x @ w) + bias), K-reduction on grid axis 2.
# ---------------------------------------------------------------------------
def _fused_matmul_kernel(x_ref, w_ref, b_ref, o_ref, acc_ref, *, apply_leaky):
    k = pl.program_id(2)

    @pl.when(k == 0)
    def _():
        acc_ref[...] = jnp.zeros_like(acc_ref)

    acc_ref[...] += jnp.dot(x_ref[...], w_ref[...],
                            preferred_element_type=jnp.float32)

    @pl.when(k == pl.num_programs(2) - 1)
    def _():
        y = acc_ref[...] + b_ref[...]
        if apply_leaky:
            y = jnp.where(y >= 0.0, y, LEAKY_SLOPE * y)
        o_ref[...] = y.astype(o_ref.dtype)


def fused_matmul(x, w, bias, *, apply_leaky, out_dtype=jnp.bfloat16):
    """x:(M,K) @ w:(K,N) on the MXU (bf16 in / f32 acc), + bias, LeakyReLU."""
    M, K = x.shape
    Kw, N = w.shape
    assert K == Kw

    # Tile selection: 256-wide M/N tiles feed the 256x256 MXU on v6e/v7x and
    # are still fine on v5e; tiny M (FC head) just rounds up to 8 sublanes.
    tm = 256 if M >= 256 else _round_up(M, 8)
    tn = 256 if N >= 256 else 128
    Kp = _round_up(K, 128)
    tk = next(t for t in (512, 256, 128) if Kp % t == 0)
    Mp = _round_up(M, tm)
    Np = _round_up(N, tn)

    xb = x.astype(jnp.bfloat16)
    wb = w.astype(jnp.bfloat16)
    if (Mp, Kp) != (M, K):
        xb = jnp.pad(xb, ((0, Mp - M), (0, Kp - K)))
    if (Kp, Np) != (K, N):
        wb = jnp.pad(wb, ((0, Kp - K), (0, Np - N)))
    b2 = jnp.pad(bias.astype(jnp.float32).reshape(1, N),
                 ((0, 0), (0, Np - N)))

    kernel = functools.partial(_fused_matmul_kernel, apply_leaky=apply_leaky)
    out = pl.pallas_call(
        kernel,
        out_shape=jax.ShapeDtypeStruct((Mp, Np), out_dtype),
        grid_spec=pltpu.PrefetchScalarGridSpec(
            num_scalar_prefetch=0,
            grid=(Mp // tm, Np // tn, Kp // tk),
            in_specs=[
                pl.BlockSpec((tm, tk), lambda i, j, k: (i, k)),
                pl.BlockSpec((tk, tn), lambda i, j, k: (k, j)),
                pl.BlockSpec((1, tn), lambda i, j, k: (0, j)),
            ],
            out_specs=pl.BlockSpec((tm, tn), lambda i, j, k: (i, j)),
            scratch_shapes=[pltpu.VMEM((tm, tn), jnp.float32)],
        ),
        compiler_params=pltpu.CompilerParams(
            dimension_semantics=("parallel", "parallel", "arbitrary"),
            vmem_limit_bytes=32 * 1024 * 1024),
    )(xb, wb, b2)
    return out[:M, :N]


# ---------------------------------------------------------------------------
# MaxPool2d(2,2): single blocked kernel over row-blocks of the NHWC tensor.
# ---------------------------------------------------------------------------
def _maxpool_kernel(x_ref, o_ref):
    x = x_ref[...]                            # (trh, 2, Wo, 2, C)
    m = jnp.maximum(x[:, 0], x[:, 1])         # (trh, Wo, 2, C)
    o_ref[...] = jnp.max(m, axis=2)           # (trh, Wo, C)


def maxpool2x2(x):
    """MaxPool2d(kernel_size=2, stride=2) on an NHWC tensor."""
    N, H, W, C = x.shape
    Ho, Wo = H // 2, W // 2
    x = x[:, :2 * Ho, :2 * Wo, :]
    # Free (contiguous-split) reshape exposing the 2x2 windows as unit axes.
    xr = x.reshape(N * Ho, 2, Wo, 2, C)
    rows = N * Ho
    per_row_bytes = 2 * Wo * 2 * C * x.dtype.itemsize
    trh = 1
    for d in range(1, rows + 1):
        if rows % d == 0 and d * per_row_bytes <= 128 * 1024:
            trh = d
    out = pl.pallas_call(
        _maxpool_kernel,
        out_shape=jax.ShapeDtypeStruct((rows, Wo, C), x.dtype),
        grid_spec=pltpu.PrefetchScalarGridSpec(
            num_scalar_prefetch=0,
            grid=(rows // trh,),
            in_specs=[pl.BlockSpec((trh, 2, Wo, 2, C),
                                   lambda i: (i, 0, 0, 0, 0))],
            out_specs=pl.BlockSpec((trh, Wo, C), lambda i: (i, 0, 0)),
        ),
        compiler_params=pltpu.CompilerParams(
            dimension_semantics=("parallel",)),
    )(xr)
    return out.reshape(N, Ho, Wo, C)


# ---------------------------------------------------------------------------
# Plain-JAX glue: im2col patch extraction (data movement only, bf16).
# ---------------------------------------------------------------------------
def im2col(x, k, stride, pad):
    """x: NHWC -> patches (N*Ho*Wo, k*k*Cin) in (kh, kw, cin) order."""
    N, H, W, C = x.shape
    if pad:
        x = jnp.pad(x, ((0, 0), (pad, pad), (pad, pad), (0, 0)))
    Hp, Wp = H + 2 * pad, W + 2 * pad
    Ho = (Hp - k) // stride + 1
    Wo = (Wp - k) // stride + 1
    cols = []
    for dy in range(k):
        for dx in range(k):
            sl = jax.lax.slice(
                x,
                (0, dy, dx, 0),
                (N, dy + (Ho - 1) * stride + 1, dx + (Wo - 1) * stride + 1, C),
                (1, stride, stride, 1))
            cols.append(sl)
    p = jnp.stack(cols, axis=3)                 # (N, Ho, Wo, k*k, C)
    return p.reshape(N * Ho * Wo, k * k * C), Ho, Wo


# ---------------------------------------------------------------------------
# Parameter construction (deterministic, synthetic).  BN (eval) scale is
# folded into the conv weights; weights stored in bf16 for the MXU.
# ---------------------------------------------------------------------------
def init_params(key, in_channels=3, split_size=1, num_boxes=2, num_classes=20):
    layer_defs = []
    for item in architecture_config:
        if isinstance(item, tuple):
            layer_defs.append(item)
        elif isinstance(item, str):
            layer_defs.append("M")
        elif isinstance(item, list):
            c1, c2, n = item
            for _ in range(n):
                layer_defs.append(c1)
                layer_defs.append(c2)

    layers = []
    cin = in_channels
    for d in layer_defs:
        if d == "M":
            layers.append({"type": "pool"})
            continue
        k, cout, s, p = d
        key, k1, k2, k3, k4, k5 = jax.random.split(key, 6)
        # Conv2d weight (bias=False), PyTorch layout (Cout, Cin, kH, kW)
        w = jax.random.normal(k1, (cout, cin, k, k), jnp.float32) * \
            jnp.sqrt(2.0 / (cin * k * k))
        # BatchNorm2d (eval mode) folded into per-channel scale/bias
        gamma = 1.0 + 0.1 * jax.random.normal(k2, (cout,), jnp.float32)
        beta = 0.1 * jax.random.normal(k3, (cout,), jnp.float32)
        rmean = 0.1 * jax.random.normal(k4, (cout,), jnp.float32)
        rvar = jax.random.uniform(k5, (cout,), jnp.float32, 0.5, 1.5)
        scale = gamma / jnp.sqrt(rvar + BN_EPS)
        bias = beta - rmean * scale
        # (Cout, Cin, kH, kW) -> (kH*kW*Cin, Cout) to match im2col row order;
        # fold the BN scale into the weight matrix, store bf16.
        w2d = jnp.transpose(w, (2, 3, 1, 0)).reshape(k * k * cin, cout)
        w2d = (w2d * scale[None, :]).astype(jnp.bfloat16)
        layers.append({"type": "conv", "w": w2d, "bias": bias,
                       "k": k, "s": s, "p": p})
        cin = cout

    S, B, C = split_size, num_boxes, num_classes
    key, k1, k2, k3, k4 = jax.random.split(key, 5)
    in1 = 1024 * S * S
    out2 = S * S * (C + B * 5)
    fcs = {
        "w1": (jax.random.normal(k1, (in1, 496), jnp.float32) /
               jnp.sqrt(in1)).astype(jnp.bfloat16),
        "b1": 0.01 * jax.random.normal(k2, (496,), jnp.float32),
        "w2": (jax.random.normal(k3, (496, out2), jnp.float32) /
               jnp.sqrt(496.0)).astype(jnp.bfloat16),
        "b2": 0.01 * jax.random.normal(k4, (out2,), jnp.float32),
    }
    return layers, fcs


# ---------------------------------------------------------------------------
# Forward passes
# ---------------------------------------------------------------------------
def forward(layers, fcs, x_nchw):
    x = jnp.transpose(x_nchw, (0, 2, 3, 1)).astype(jnp.bfloat16)  # NCHW->NHWC
    for layer in layers:
        if layer["type"] == "pool":
            x = maxpool2x2(x)
        else:
            patches, Ho, Wo = im2col(x, layer["k"], layer["s"], layer["p"])
            y = fused_matmul(patches, layer["w"], layer["bias"],
                             apply_leaky=True, out_dtype=jnp.bfloat16)
            x = y.reshape(x.shape[0], Ho, Wo, -1)
    N = x.shape[0]
    # match torch.flatten(x, start_dim=1) on NCHW (C, H, W ordering)
    flat = jnp.transpose(x, (0, 3, 1, 2)).reshape(N, -1)
    # Dropout(p=0.0) is identity.
    h = fused_matmul(flat, fcs["w1"], fcs["b1"], apply_leaky=True,
                     out_dtype=jnp.bfloat16)
    return fused_matmul(h, fcs["w2"], fcs["b2"], apply_leaky=False,
                        out_dtype=jnp.float32)


def ref_forward(layers, fcs, x_nchw):
    """Pure-JAX reference of the same math (bf16 in / f32 acc, like kernel)."""
    x = jnp.transpose(x_nchw, (0, 2, 3, 1)).astype(jnp.bfloat16)
    for layer in layers:
        if layer["type"] == "pool":
            N, H, W, C = x.shape
            x = x.reshape(N, H // 2, 2, W // 2, 2, C).max(axis=(2, 4))
        else:
            patches, Ho, Wo = im2col(x, layer["k"], layer["s"], layer["p"])
            y = jnp.dot(patches, layer["w"],
                        preferred_element_type=jnp.float32) + layer["bias"]
            y = jnp.where(y >= 0.0, y, LEAKY_SLOPE * y)
            x = y.astype(jnp.bfloat16).reshape(x.shape[0], Ho, Wo, -1)
    N = x.shape[0]
    flat = jnp.transpose(x, (0, 3, 1, 2)).reshape(N, -1)
    h = jnp.dot(flat, fcs["w1"], preferred_element_type=jnp.float32) + fcs["b1"]
    h = jnp.where(h >= 0.0, h, LEAKY_SLOPE * h).astype(jnp.bfloat16)
    return jnp.dot(h, fcs["w2"], preferred_element_type=jnp.float32) + fcs["b2"]


# ---------------------------------------------------------------------------
if __name__ == "__main__":
    key = jax.random.PRNGKey(0)
    pkey, xkey = jax.random.split(key)

    # split_size=1 so the FC head's hard-coded 1024*S*S matches a 64x64 input
    # (the darknet downsamples spatial dims by 64x -> 1x1x1024 feature map).
    S, B, C = 1, 2, 20
    layers, fcs = init_params(pkey, in_channels=3,
                              split_size=S, num_boxes=B, num_classes=C)

    x = jax.random.normal(xkey, (2, 3, 64, 64), jnp.float32)  # NCHW like torch

    out = forward(layers, fcs, x)
    out = jax.block_until_ready(out)

    ref = jax.block_until_ready(ref_forward(layers, fcs, x))

    assert out.shape == (2, S * S * (C + B * 5)), out.shape
    assert bool(jnp.all(jnp.isfinite(out)))
    rel_err = float(jnp.max(jnp.abs(out - ref)) /
                    (jnp.max(jnp.abs(ref)) + 1e-6))
    assert rel_err < 1e-2, f"mismatch vs reference: rel_err={rel_err}"

    print("KERNEL_OK")
</pallas_src>

<mosaic_0001>
module attributes {stable_mosaic.version = 11 : i64} {
  func.func @_fused_matmul_kernel(%arg0: i32, %arg1: i32, %arg2: i32, %arg3: memref<256x256xbf16, #tpu.memory_space<vmem>>, %arg4: memref<256x128xbf16, #tpu.memory_space<vmem>>, %arg5: memref<1x128xf32, #tpu.memory_space<vmem>>, %arg6: memref<256x128xbf16, #tpu.memory_space<vmem>>, %arg7: memref<256x128xf32, #tpu.memory_space<vmem>>) attributes {dimension_semantics = [#tpu.dimension_semantics<parallel>, #tpu.dimension_semantics<parallel>, #tpu.dimension_semantics<arbitrary>], iteration_bounds = array<i64: 8, 1, 1>, scalar_prefetch = 0 : i64, scratch_operands = 1 : i64, tpu.core_type = #tpu.core_type<tc>, window_params = [{transform_indices = @transform_0, window_bounds = array<i64: 256, 256>}, {transform_indices = @transform_1, window_bounds = array<i64: 256, 128>}, {transform_indices = @transform_2, window_bounds = array<i64: 1, 128>}, {transform_indices = @transform_3, window_bounds = array<i64: 256, 128>}]} {
    %c0_i32 = arith.constant 0 : i32
    %0 = arith.cmpi eq, %arg2, %c0_i32 : i32
    %1 = arith.extui %0 : i1 to i32
    %c0_i32_0 = arith.constant 0 : i32
    %2 = arith.cmpi ne, %1, %c0_i32_0 : i32
    scf.if %2 {
      %cst_10 = arith.constant 0.000000e+00 : f32
      %12 = vector.broadcast %cst_10 : f32 to vector<256x128xf32>
      %c0_11 = arith.constant 0 : index
      %c0_12 = arith.constant 0 : index
      %13 = vector.load %arg7[%c0_11, %c0_12] : memref<256x128xf32, #tpu.memory_space<vmem>>, vector<256x128xf32>
      tpu.vector_store %arg7[%c0_11, %c0_12], %12 {strides = array<i32>} : memref<256x128xf32, #tpu.memory_space<vmem>>, vector<256x128xf32>,
    } else {
    }
    %c0 = arith.constant 0 : index
    %c0_1 = arith.constant 0 : index
    %3 = vector.load %arg7[%c0, %c0_1] : memref<256x128xf32, #tpu.memory_space<vmem>>, vector<256x128xf32>
    %c0_2 = arith.constant 0 : index
    %c0_3 = arith.constant 0 : index
    %4 = vector.load %arg3[%c0_2, %c0_3] : memref<256x256xbf16, #tpu.memory_space<vmem>>, vector<256x256xbf16>
    %c0_4 = arith.constant 0 : index
    %c0_5 = arith.constant 0 : index
    %5 = vector.load %arg4[%c0_4, %c0_5] : memref<256x128xbf16, #tpu.memory_space<vmem>>, vector<256x128xbf16>
    %cst = arith.constant dense<0.000000e+00> : vector<256x128xf32>
    %6 = tpu.matmul %4, %5, %cst {dimension_numbers = #tpu.dot_dimension_numbers<[1], [0], [0], [1], [0, 0, 1, 1], [], []>} : vector<256x256xbf16>, vector<256x128xbf16>, vector<256x128xf32> -> vector<256x128xf32>
    %7 = arith.addf %3, %6 : vector<256x128xf32>
    %c0_6 = arith.constant 0 : index
    %c0_7 = arith.constant 0 : index
    %8 = vector.load %arg7[%c0_6, %c0_7] : memref<256x128xf32, #tpu.memory_space<vmem>>, vector<256x128xf32>
    tpu.vector_store %arg7[%c0_6, %c0_7], %7 {strides = array<i32>} : memref<256x128xf32, #tpu.memory_space<vmem>>, vector<256x128xf32>,
    %c0_i32_8 = arith.constant 0 : i32
    %9 = arith.cmpi eq, %arg2, %c0_i32_8 : i32
    %10 = arith.extui %9 : i1 to i32
    %c0_i32_9 = arith.constant 0 : i32
    %11 = arith.cmpi ne, %10, %c0_i32_9 : i32
    scf.if %11 {
      %c0_10 = arith.constant 0 : index
      %c0_11 = arith.constant 0 : index
      %12 = vector.load %arg7[%c0_10, %c0_11] : memref<256x128xf32, #tpu.memory_space<vmem>>, vector<256x128xf32>
      %c0_12 = arith.constant 0 : index
      %c0_13 = arith.constant 0 : index
      %13 = vector.load %arg5[%c0_12, %c0_13] : memref<1x128xf32, #tpu.memory_space<vmem>>, vector<1x128xf32>
      %14 = vector.broadcast %13 : vector<1x128xf32> to vector<256x128xf32>
      %15 = arith.addf %12, %14 : vector<256x128xf32>
      %cst_14 = arith.constant 0.000000e+00 : f32
      %16 = vector.broadcast %cst_14 : f32 to vector<256x128xf32>
      %17 = arith.cmpf oge, %15, %16 : vector<256x128xf32>
      %cst_15 = arith.constant 1.000000e-01 : f32
      %18 = vector.broadcast %cst_15 : f32 to vector<256x128xf32>
      %19 = arith.mulf %18, %15 : vector<256x128xf32>
      %20 = arith.select %17, %15, %19 : vector<256x128xi1>, vector<256x128xf32>
      %21 = arith.truncf %20 : vector<256x128xf32> to vector<256x128xbf16>
      %c0_16 = arith.constant 0 : index
      %c0_17 = arith.constant 0 : index
      %22 = vector.load %arg6[%c0_16, %c0_17] : memref<256x128xbf16, #tpu.memory_space<vmem>>, vector<256x128xbf16>
      tpu.vector_store %arg6[%c0_16, %c0_17], %21 {strides = array<i32>} : memref<256x128xbf16, #tpu.memory_space<vmem>>, vector<256x128xbf16>,
    } else {
    }
    return
  }
  func.func @transform_0(%arg0: i32, %arg1: i32, %arg2: i32) -> (i32, i32) {
    %c0_i32 = arith.constant 0 : i32
    return %arg0, %arg2 : i32, i32
  }
  func.func @transform_1(%arg0: i32, %arg1: i32, %arg2: i32) -> (i32, i32) {
    %c0_i32 = arith.constant 0 : i32
    return %arg2, %arg1 : i32, i32
  }
  func.func @transform_2(%arg0: i32, %arg1: i32, %arg2: i32) -> (i32, i32) {
    %c0_i32 = arith.constant 0 : i32
    %c0_i32_0 = arith.constant 0 : i32
    return %c0_i32, %arg1 : i32, i32
  }
  func.func @transform_3(%arg0: i32, %arg1: i32, %arg2: i32) -> (i32, i32) {
    %c0_i32 = arith.constant 0 : i32
    return %arg0, %arg1 : i32, i32
  }
}

</mosaic_0001>

<bundles_post_ra>
// kernel: tpu_custom_call.1
= control target key start
LH: loop header
LB: loop body
LE: loop exit
PB: predicated region body
PF: predicated region fallthrough
CT: control target
= control target key end

     0   :  { %8 = vsyncpa [#allocation4], 0  ;;  %s2273_s0 = inlined_call_operand.hbm [shape: bf16[2048,256], index: 0, kind: input, shape index: {}]   ;;  %s2274_s1 = inlined_call_operand.hbm [shape: bf16[256,128], index: 1, kind: input, shape index: {}]   ;;  %s2275_s2 = inlined_call_operand.vmem [shape: f32[1,128], index: 2, kind: input, shape index: {}]   ;;  %s2276_s3 = inlined_call_operand.hbm [shape: bf16[2048,128], index: 3, kind: output, shape index: {}]  }
   0x1   :  { %10 = vsyncpa [#allocation4 + $0x1], 0 }
   0x2   :  { %11 = vsyncpa [#allocation7], 0 }
   0x3   :  { %12 = vsyncpa [#allocation5], 0 }
   0x4   :  { %14 = vsyncpa [#allocation5 + $0x1], 0  ;;  %s2003_s12 = smov 0   ;;  %s2005_s13 = smov 0  }
   0x5   :  { %s2007_s14 = smov 0   ;;  %s2009_s15 = smov 0  }
   0x6   :  { %s2011_s16 = smov 0   ;;  %s2013_s17 = smov 0  }
   0x7 LB: > { %s1333_s18 = sadd.s32 4294967295, %s1972_s17   ;;  %s1334_s19 = sadd.s32 4294967294, %s1972_s17   ;;  %s1972_s17 = sphi %s2013_s17, %s20_s17   ;;  %s1968_s16 = sphi %s2011_s16, %s2293_s16   ;;  %s1964_s15 = sphi %s2009_s15, %s2292_s15   ;;  %s1960_s14 = sphi %s2007_s14, %s2291_s14   ;;  %s1956_s13 = sphi %s2005_s13, %s2290_s13   ;;  %s1952_s12 = sphi %s2003_s12, %s2289_s12  }
   0x8   : > { %p61_p0 = scmp.ne.s32.totalorder %s1956_s13, %s1952_s12  ;;  %p2037_p1 = scmp.eq.s32.totalorder %s1333_s18, 0 }
   0x9   : > { %p2041_p2 = scmp.eq.s32.totalorder %s1333_s18, 7  ;;  %p147_p3 = scmp.eq.s32.totalorder %s1334_s19, 7 }
   0xa   : > { %p2047_p4 = por %p2037_p1, %p61_p0  ;;  %p1335_p5 = scmp.ge.s32.totalorder %s1972_s17, 1 }
   0xb   : > { %p2052_p6 = por %p147_p3, %p61_p0  ;;  %p154_p7 = scmp.lt.s32.totalorder %s1972_s17, 9 }
   0xc   : > { %s1974_s25 = smov [#allocation6]   ;;  %s39_s28 = sadd.s32 1, %s1968_s16 }
   0xd   : > { %s2281_s23 = scalar_select %p2052_p6, 1, 0 }
   0xe   : > { %p2057_p8 = pnand %p1335_p5, %p154_p7  ;;  %s170_s26 = sshll.u32 %s1974_s25, 4  ;;  %s171_s26 = int_to_ptr.vmem [resolvable:$true] %s170_s26 }
   0xf   : > { %s1845_s29 = scalar_lea.vmem %s171_s26, 2048  ;;  %p1853_p3 = scmp.lt.s32.totalorder %s171_s26, %s171_s26 }
  0x10   : > { %p1699_p9 = pneg %p2057_p8  ;;  %p1846_p12 = scmp.ne.s32.totalorder %s171_s26, %s1845_s29 }
  0x11   : > { %p1854_p5 = scmp.lt.s32.totalorder %s1845_s29, %s1845_s29 }
  0x12   : > { %p2065_p10 = pnand %p1699_p9, %p2037_p1 }
  0x13   : > { %p1855_p7 = por %p1854_p5, %p1853_p3 }
  0x14   : > { %p1836_p11 = pneg %p2065_p10 }
  0x16   : > { %p1848_p13 = pnand %p1846_p12, %p1836_p11 }
  0x18   : > { %p1849_p0 = pneg %p1848_p13 }
  0x1a   : > { %p1856_p6 = pnand %p1855_p7, %p1849_p0 }
  0x1c   : > { %1859 = shalt.err (!%p1856_p6)
}
  0x1d   : > { %s1975_s30 = smov 64   ;;  %s1976_s4 = smov 4  }
  0x1e   : > { %1702 = dma.hbm_to_vmem [thread:$0]  (!%p2065_p10), %s2274_s1, 2048, %s171_s26, [#allocation7], %s1975_s30, %s1975_s30, %s1976_s4  }
  0x1f   : > { %p41_p9 = scmp.ge.s32.totalorder %s39_s28, 8  ;;  %s48_s7 = sadd.s32 1, %s1960_s14 }
  0x20   : > { %p55_p6 = scmp.ne.s32.totalorder %s1960_s14, %s1956_s13  ;;  %p56_p11 = scmp.eq.s32.totalorder %s1972_s17, 0 }
  0x21   : > { %s2295_s28 = smov (%p41_p9, %s39_s28), 0  ;;  %p1712_p0 = scmp.lt.s32.totalorder %s1972_s17, 8 }
  0x22   : > { %p2083_p12 = por %p56_p11, %p55_p6  ;;  %p2089_p13 = por %p2041_p2, %p55_p6 }
  0x23   : > { %s43_s10 = ssub.s32 %s1968_s16, %s2295_s28  ;;  %s190_s11 = sand.u32 1, %s1960_s14  }
  0x24   : > { %s2285_s9 = scalar_select %p2089_p13, 1, 0 }
  0x25   : > { %p46_p10 = scmp.eq.s32.totalorder %s43_s10, 0  ;;  %s1339_s18 = sshll.u32 %s190_s11, 8 }
  0x26   : > { %s1434_s25 = sshll.u32 %s1968_s16, 12  ;;  %s194_s30 = scalar_lea.vmem [#allocation3], %s1339_s18 }
  0x27   : > { %s2098_s19 = scalar_select %p46_p10, %s1960_s14, %s48_s7  }
  0x28   : > { %s203_s29 = scalar_lea.hbm %s2273_s0, %s1434_s25  ;;  %s204_s4 = sshll.u32 %s194_s30, 4  ;;  %s205_s4 = int_to_ptr.vmem [resolvable:$true] %s204_s4 }
  0x29   : > { %p2106_p2 = pnand %p1712_p0, %p2083_p12  ;;  %s191_s5 = scalar_lea.sflag [#allocation4], %s190_s11 }
  0x2a   : > { %s1873_s6 = scalar_lea.vmem %s205_s4, 4096  ;;  %s1977_s7 = smov [#allocation3]  }
  0x2b   : > { %p1862_p3 = pneg %p2106_p2  ;;  %p1874_p5 = scmp.ne.s32.totalorder %s205_s4, %s1873_s6 }
  0x2c   : > { %s1878_s10 = sshll.u32 %s1977_s7, 4  ;;  %s1879_s10 = int_to_ptr.vmem [resolvable:$false] %s1878_s10 }
  0x2d   : > { %p1876_p7 = pnand %p1874_p5, %p1862_p3  ;;  %s1880_s25 = scalar_lea.vmem %s1879_s10, 8192 }
  0x2e   : > { %p1881_p6 = scmp.lt.s32.totalorder %s205_s4, %s1879_s10  ;;  %p1882_p11 = scmp.lt.s32.totalorder %s1880_s25, %s1873_s6 }
  0x2f   : > { %p1877_p9 = pneg %p1876_p7 }
  0x30   : > { %p1883_p10 = por %p1882_p11, %p1881_p6 }
  0x32   : > { %p1884_p13 = pnand %p1883_p10, %p1877_p9 }
  0x34   : > { %1887 = shalt.err (!%p1884_p13)
}
  0x35   : > { %s1978_s8 = smov 128   ;;  %s1979_s18 = smov 8  }
  0x36   : > { %1706 = dma.hbm_to_vmem [thread:$0]  (!%p2106_p2), %s203_s29, 4096, %s205_s4, %s191_s5, %s1978_s8, %s1978_s8, %s1979_s18  }
  0x37   : > { %216 = sbr.rel (%p2057_p8) target bundleno = 374 (0x176), region = 32  ;;  %s2117_s11 = sand.u32 (!%p2057_p8), 1, %s1956_s13  }
  0x38   : > { %s1344_s26 = sshll.u32 (!%p2057_p8), %s2117_s11, 8  ;;  %s219_s27 = scalar_lea.sflag (!%p2057_p8), [#allocation4], %s2117_s11 }
  0x39   : > { %s2121_s30 = scalar_lea.vmem (!%p2057_p8), [#allocation3], %s1344_s26 }
  0x3c   : > { %1939 = dma.done.wait (%p2047_p4), %s219_s27, 4096  }
  0x3d   : > { %1941 = vsyncadd (%p2047_p4), %s219_s27, 4294963200 }
  0x3e   : > { %1943 = dma.done.wait (%p2037_p1), [#allocation7], 2048  }
  0x3f   : > { %1945 = vsyncadd (%p2037_p1), [#allocation7], 4294965248  ;;  %v1770_v0 = vld [vmem:[#allocation6 + $0x78] sm:$0xff]   ;;  %v1772_v2 = vld [vmem:[#allocation6 + $0x70] sm:$0xff]   ;;  %s1346_s24 = sshll.u32 %s2117_s11, 7  ;;  %s1467_s4 = sshll.u32 %s1964_s15, 11 }
  0x40   : > { %v1771_v1 = vld [vmem:[#allocation6 + $0x38] sm:$0xff]   ;;  %1563 = vmatprep.subr.bf16.mxu0 %v1770_v0  ;;  %1675 = vmatprep.subr.bf16.mxu1 %v1770_v0  ;;  %v1773_v3 = vld [vmem:[#allocation6 + $0x30] sm:$0xff]   ;;  %v1774_v4 = vld [vmem:[#allocation6 + $0x68] sm:$0xff]   ;;  %s2175_s29 = scalar_lea.vmem [#allocation8], %s1346_s24  ;;  %s2222_s7 = scalar_lea.hbm %s2276_s3, %s1467_s4 }
  0x41   : > { %1564 = vmatpush3.bf16.msra.mxu0 %v1771_v1  ;;  %1683 = vmatpush3.bf16.msra.mxu1 %v1771_v1  ;;  %v1775_v5 = vld [vmem:[#allocation6 + $0x28] sm:$0xff]   ;;  %v1776_v6 = vld [vmem:[#allocation6 + $0x60] sm:$0xff]   ;;  %v1778_v8 = vld [vmem:[#allocation6 + $0x58] sm:$0xff]   ;;  %s1218_s21 = sshll.u32 %s2175_s29, 4  ;;  %s1204_s15 = scalar_lea.sflag [#allocation5], %s2117_s11  ;;  %s2224_s21 = int_to_ptr.vmem [resolvable:$true] %s1218_s21 }
  0x42   : > { %1565 = vmatprep.subr.bf16.mxu0 %v1772_v2  ;;  %1676 = vmatprep.subr.bf16.mxu1 %v1772_v2  ;;  %v1777_v7 = vld [vmem:[#allocation6 + $0x20] sm:$0xff]   ;;  %v1779_v9 = vld [vmem:[#allocation6 + $0x18] sm:$0xff]   ;;  %v1780_v10 = vld [vmem:[#allocation6 + $0x50] sm:$0xff]   ;;  %s1888_s10 = scalar_lea.vmem %s2224_s21, 2048  ;;  %p2287_p4 = scmp.ne.s32.totalorder %s2285_s9, 0 }
  0x43   : > { %v1788_v11 = vld [vmem:[%s2121_s30 + $0x4] ss:$8 sps:$4 sm:$0xff]   ;;  %v1781_v13 = vld [vmem:[#allocation6 + $0x10] sm:$0xff]   ;;  %v1786_v18 = vld [vmem:[%s2121_s30] ss:$8 sps:$4 sm:$0xff]   ;;  %p1889_p1 = scmp.ne.s32.totalorder %s2224_s21, %s1888_s10  ;;  %s1980_s25 = smov [#allocation8]  }
  0x44   : > { %v1791_v12 = vld [vmem:[%s2121_s30 + $0x84] ss:$8 sps:$4 sm:$0xff]   ;;  %680 = vmatprep.mubr.bf16.mxu0 %v1788_v11  ;;  %v1789_v19 = vld [vmem:[%s2121_s30 + $0x80] ss:$8 sps:$4 sm:$0xff]   ;;  %v1792_v20 = vld [vmem:[%s2121_s30 + $0x14] ss:$8 sps:$4 sm:$0xff]  }
  0x45   : > { %1566 = vmatpush3.bf16.msra.mxu0 %v1773_v3  ;;  %1684 = vmatpush3.bf16.msra.mxu1 %v1773_v3  ;;  %v1782_v14 = vld [vmem:[#allocation6 + $0x48] sm:$0xff]   ;;  %v1784_v16 = vld [vmem:[#allocation6 + $0x40] sm:$0xff]   ;;  %v1794_v21 = vld [vmem:[%s2121_s30 + $0x94] ss:$8 sps:$4 sm:$0xff]   ;;  %p1890_p8 = pnand %p1889_p1, %p2287_p4  ;;  %s1892_s8 = sshll.u32 %s1980_s25, 4  ;;  %s1893_s8 = int_to_ptr.vmem [resolvable:$false] %s1892_s8 }
  0x46   : > { %1567 = vmatprep.subr.bf16.mxu0 %v1774_v4  ;;  %1677 = vmatprep.subr.bf16.mxu1 %v1774_v4  ;;  %v1783_v15 = vld [vmem:[#allocation6 + $0x8] sm:$0xff]   ;;  %v1785_v17 = vld [vmem:[#allocation6] sm:$0xff]   ;;  %v1796_v22 = vld [vmem:[%s2121_s30 + $0x10] ss:$8 sps:$4 sm:$0xff]   ;;  %s1894_s18 = scalar_lea.vmem %s1893_s8, 4096  ;;  %p1895_p13 = scmp.lt.s32.totalorder %s2224_s21, %s1893_s8 }
  0x47   : > { %744 = vmatprep.mubr.bf16.mxu1 %v1791_v12  ;;  %v1797_v23 = vld [vmem:[%s2121_s30 + $0x90] ss:$8 sps:$4 sm:$0xff]   ;;  %v1798_v24 = vld [vmem:[%s2121_s30 + $0x24] ss:$8 sps:$4 sm:$0xff]   ;;  %v1802_v26 = vld [vmem:[%s2121_s30 + $0x20] ss:$8 sps:$4 sm:$0xff]   ;;  %p1891_p12 = pneg %p1890_p8  ;;  %p1896_p0 = scmp.lt.s32.totalorder %s1894_s18, %s1888_s10 }
  0x48   : > { %v1800_v25 = vld [vmem:[%s2121_s30 + $0xa4] ss:$8 sps:$4 sm:$0xff]   ;;  %v1803_v27 = vld [vmem:[%s2121_s30 + $0xa0] ss:$8 sps:$4 sm:$0xff]   ;;  %v1804_v28 = vld [vmem:[%s2121_s30 + $0x34] ss:$8 sps:$4 sm:$0xff]  }
  0x49   : > { %1568 = vmatpush3.bf16.msra.mxu0 %v1775_v5  ;;  %1685 = vmatpush3.bf16.msra.mxu1 %v1775_v5  ;;  %v1806_v29 = vld [vmem:[%s2121_s30 + $0xb4] ss:$8 sps:$4 sm:$0xff]   ;;  %v1808_v30 = vld [vmem:[%s2121_s30 + $0x30] ss:$8 sps:$4 sm:$0xff]   ;;  %v1810_v32 = vld [vmem:[%s2121_s30 + $0x44] ss:$8 sps:$4 sm:$0xff]   ;;  %p1897_p2 = por %p1896_p0, %p1895_p13 }
  0x4a   : > { %1569 = vmatprep.subr.bf16.mxu0 %v1776_v6  ;;  %1678 = vmatprep.subr.bf16.mxu1 %v1776_v6  ;;  %v1809_v31 = vld [vmem:[%s2121_s30 + $0xb0] ss:$8 sps:$4 sm:$0xff]   ;;  %v1812_v33 = vld [vmem:[%s2121_s30 + $0xc4] ss:$8 sps:$4 sm:$0xff]   ;;  %v1814_v34 = vld [vmem:[%s2121_s30 + $0x40] ss:$8 sps:$4 sm:$0xff]  }
  0x4b   : > { %v1815_v35 = vld [vmem:[%s2121_s30 + $0xc0] ss:$8 sps:$4 sm:$0xff]   ;;  %v1816_v36 = vld [vmem:[%s2121_s30 + $0x54] ss:$8 sps:$4 sm:$0xff]   ;;  %v1820_v38 = vld [vmem:[%s2121_s30 + $0x50] ss:$8 sps:$4 sm:$0xff]   ;;  %p1898_p3 = pnand %p1897_p2, %p1891_p12 }
  0x4c   : > { %v1818_v37 = vld [vmem:[%s2121_s30 + $0xd4] ss:$8 sps:$4 sm:$0xff]   ;;  %v1821_v39 = vld [vmem:[%s2121_s30 + $0xd0] ss:$8 sps:$4 sm:$0xff]   ;;  %v1822_v40 = vld [vmem:[%s2121_s30 + $0x64] ss:$8 sps:$4 sm:$0xff]  }
  0x4d   : > { %1570 = vmatpush3.bf16.msra.mxu0 %v1777_v7  ;;  %1686 = vmatpush3.bf16.msra.mxu1 %v1777_v7  ;;  %v1824_v41 = vld [vmem:[%s2121_s30 + $0xe4] ss:$8 sps:$4 sm:$0xff]   ;;  %v1826_v42 = vld [vmem:[%s2121_s30 + $0x60] ss:$8 sps:$4 sm:$0xff]   ;;  %v1828_v44 = vld [vmem:[%s2121_s30 + $0x74] ss:$8 sps:$4 sm:$0xff]  }
  0x4e   : > { %1571 = vmatprep.subr.bf16.mxu0 %v1778_v8  ;;  %1679 = vmatprep.subr.bf16.mxu1 %v1778_v8  ;;  %v1827_v43 = vld [vmem:[%s2121_s30 + $0xe0] ss:$8 sps:$4 sm:$0xff]   ;;  %v1830_v45 = vld [vmem:[%s2121_s30 + $0xf4] ss:$8 sps:$4 sm:$0xff]   ;;  %v1832_v46 = vld [vmem:[%s2121_s30 + $0x70] ss:$8 sps:$4 sm:$0xff]  }
  0x4f   : > { %v1833_v47 = vld [vmem:[%s2121_s30 + $0xf0] ss:$8 sps:$4 sm:$0xff]   ;;  %v2166_v51 = vld [vmem:[%s2275_s2] ss:$0 sm:$0xff] }
  0x51   : > { %1572 = vmatpush3.bf16.msra.mxu0 %v1779_v9  ;;  %1687 = vmatpush3.bf16.msra.mxu1 %v1779_v9 }
  0x52   : > { %1573 = vmatprep.subr.bf16.mxu0 %v1780_v10  ;;  %1680 = vmatprep.subr.bf16.mxu1 %v1780_v10 }
  0x55   : > { %1574 = vmatpush3.bf16.msra.mxu0 %v1781_v13  ;;  %1688 = vmatpush3.bf16.msra.mxu1 %v1781_v13 }
  0x56   : > { %1575 = vmatprep.subr.bf16.mxu0 %v1782_v14  ;;  %1681 = vmatprep.subr.bf16.mxu1 %v1782_v14 }
  0x59   : > { %1576 = vmatpush3.bf16.msra.mxu0 %v1783_v15  ;;  %1689 = vmatpush3.bf16.msra.mxu1 %v1783_v15 }
  0x5a   : > { %1577 = vmatprep.subr.bf16.mxu0 %v1784_v16  ;;  %1682 = vmatprep.subr.bf16.mxu1 %v1784_v16 }
  0x5d   : > { %1578 = vmatpush3.bf16.msra.mxu0 %v1785_v17  ;;  %1690 = vmatpush3.bf16.msra.mxu1 %v1785_v17 }
  0x60   : > { %681 = vmatmul.mubr.bf16.vlgmr.msra.gmra.mxu0 %v1786_v18  ;;  %745 = vmatmul.mubr.bf16.vlgmr.msra.gmra.mxu1 %v1789_v19 }
  0x61   : > { %688 = vmatprep.mubr.bf16.mxu0 %v1792_v20  ;;  %752 = vmatprep.mubr.bf16.mxu1 %v1794_v21 }
  0x68   : > { %689 = vmatmul.mubr.bf16.gmra.mxu0 %v1796_v22  ;;  %753 = vmatmul.mubr.bf16.gmra.mxu1 %v1797_v23 }
  0x69   : > { %696 = vmatprep.mubr.bf16.mxu0 %v1798_v24  ;;  %760 = vmatprep.mubr.bf16.mxu1 %v1800_v25 }
  0x70   : > { %697 = vmatmul.mubr.bf16.gmra.mxu0 %v1802_v26  ;;  %761 = vmatmul.mubr.bf16.gmra.mxu1 %v1803_v27 }
  0x71   : > { %704 = vmatprep.mubr.bf16.mxu0 %v1804_v28  ;;  %768 = vmatprep.mubr.bf16.mxu1 %v1806_v29 }
  0x78   : > { %705 = vmatmul.mubr.bf16.gmra.mxu0 %v1808_v30  ;;  %769 = vmatmul.mubr.bf16.gmra.mxu1 %v1809_v31 }
  0x79   : > { %712 = vmatprep.mubr.bf16.mxu0 %v1810_v32  ;;  %776 = vmatprep.mubr.bf16.mxu1 %v1812_v33 }
  0x80   : > { %713 = vmatmul.mubr.bf16.gmra.mxu0 %v1814_v34  ;;  %777 = vmatmul.mubr.bf16.gmra.mxu1 %v1815_v35 }
  0x81   : > { %720 = vmatprep.mubr.bf16.mxu0 %v1816_v36  ;;  %784 = vmatprep.mubr.bf16.mxu1 %v1818_v37 }
  0x88   : > { %721 = vmatmul.mubr.bf16.gmra.mxu0 %v1820_v38  ;;  %785 = vmatmul.mubr.bf16.gmra.mxu1 %v1821_v39 }
  0x89   : > { %728 = vmatprep.mubr.bf16.mxu0 %v1822_v40  ;;  %792 = vmatprep.mubr.bf16.mxu1 %v1824_v41 }
  0x90   : > { %729 = vmatmul.mubr.bf16.gmra.mxu0 %v1826_v42  ;;  %793 = vmatmul.mubr.bf16.gmra.mxu1 %v1827_v43 }
  0x91   : > { %736 = vmatprep.mubr.bf16.mxu0 %v1828_v44  ;;  %800 = vmatprep.mubr.bf16.mxu1 %v1830_v45 }
  0x98   : > { %737 = vmatmul.mubr.bf16.gmra.mxu0 %v1832_v46  ;;  %801 = vmatmul.mubr.bf16.gmra.mxu1 %v1833_v47 }
 0x120   : > { %v1579_v48 = vpop.f32.mrf.mxu0  ;;  %v1627_v49 = vpop.f32.mrf.mxu1 }
 0x122   : > { %v1580_v50 = vpop.f32.mrf.mxu0  ;;  %v1628_v52 = vpop.f32.mrf.mxu1 }
 0x123   : > { %v1581_v53 = vadd.f32 %v1580_v50, %v1579_v48  ;;  %v1629_v54 = vadd.f32 %v1628_v52, %v1627_v49 }
 0x124   : > { %v1582_v55 = vpop.f32.mrf.mxu0  ;;  %v1630_v56 = vpop.f32.mrf.mxu1 }
 0x125   : > { %v915_v57 = vadd.f32 %v1581_v53, %v2166_v51  ;;  %v931_v58 = vadd.f32 %v1629_v54, %v2166_v51 }
 0x126   : > { %v1583_v59 = vpop.f32.mrf.mxu0  ;;  %v1631_v60 = vpop.f32.mrf.mxu1 }
 0x127   : > { %v1584_v61 = vadd.f32 %v1583_v59, %v1582_v55  ;;  %v1632_v62 = vadd.f32 %v1631_v60, %v1630_v56  ;;  %v979_v1 = vmul.f32 0.1, %v915_v57  ;;  %v995_v2 = vmul.f32 0.1, %v931_v58 }
 0x128   : > { %v1585_v63 = vpop.f32.mrf.mxu0  ;;  %v1633_v0 = vpop.f32.mrf.mxu1  ;;  %vm947_vm0 = vcmp.ge.f32.partialorder %v915_v57, 0.0  ;;  %vm963_vm1 = vcmp.ge.f32.partialorder %v931_v58, 0.0 }
 0x129   : > { %v916_v3 = vadd.f32 %v1584_v61, %v2166_v51  ;;  %v932_v4 = vadd.f32 %v1632_v62, %v2166_v51  ;;  %v1011_v13 = vsel %vm947_vm0, %v915_v57, %v979_v1  ;;  %v1027_v14 = vsel %vm963_vm1, %v931_v58, %v995_v2 }
 0x12a   : > { %v1586_v5 = vpop.f32.mrf.mxu0  ;;  %v1634_v6 = vpop.f32.mrf.mxu1 }
 0x12b   : > { %v1587_v7 = vadd.f32 %v1586_v5, %v1585_v63  ;;  %v1635_v8 = vadd.f32 %v1634_v6, %v1633_v0  ;;  %vm948_vm2 = vcmp.ge.f32.partialorder %v916_v3, 0.0  ;;  %v980_v9 = vmul.f32 0.1, %v916_v3 }
 0x12c   : > { %vm964_vm3 = vcmp.ge.f32.partialorder %v932_v4, 0.0  ;;  %v996_v10 = vmul.f32 0.1, %v932_v4  ;;  %v1588_v11 = vpop.f32.mrf.mxu0  ;;  %v1636_v12 = vpop.f32.mrf.mxu1 }
 0x12d   : > { %v1012_v15 = vsel %vm948_vm2, %v916_v3, %v980_v9  ;;  %v917_v17 = vadd.f32 %v1587_v7, %v2166_v51  ;;  %v933_v18 = vadd.f32 %v1635_v8, %v2166_v51 }
 0x12e   : > { %v1028_v16 = vsel %vm964_vm3, %v932_v4, %v996_v10  ;;  %v1589_v19 = vpop.f32.mrf.mxu0  ;;  %v1637_v20 = vpop.f32.mrf.mxu1  ;;  %v1471_v21 = vpack.c.bf16 %v1012_v15, %v1011_v13 }
 0x12f   : > { %v1511_v22 = vpack.c.bf16 %v1028_v16, %v1027_v14  ;;  %v1590_v23 = vadd.f32 %v1589_v19, %v1588_v11  ;;  %v1638_v24 = vadd.f32 %v1637_v20, %v1636_v12  ;;  %v981_v27 = vmul.f32 0.1, %v917_v17 }
 0x130   : > { %v1591_v25 = vpop.f32.mrf.mxu0  ;;  %v1639_v26 = vpop.f32.mrf.mxu1  ;;  %1472 = vst [vmem:[%s2175_s29] sm:$0xff] %v1471_v21   ;;  %v997_v28 = vmul.f32 0.1, %v933_v18  ;;  %vm949_vm4 = vcmp.ge.f32.partialorder %v917_v17, 0.0  ;;  %vm965_vm5 = vcmp.ge.f32.partialorder %v933_v18, 0.0 }
 0x131   : > { %1555 = vst [vmem:[%s2175_s29 + $0x40] sm:$0xff] %v1511_v22   ;;  %v918_v29 = vadd.f32 %v1590_v23, %v2166_v51  ;;  %v934_v30 = vadd.f32 %v1638_v24, %v2166_v51  ;;  %v1013_v41 = vsel %vm949_vm4, %v917_v17, %v981_v27 }
 0x132   : > { %v1592_v31 = vpop.f32.mrf.mxu0  ;;  %v1640_v32 = vpop.f32.mrf.mxu1  ;;  %v1029_v42 = vsel %vm965_vm5, %v933_v18, %v997_v28 }
 0x133   : > { %v1593_v33 = vadd.f32 %v1592_v31, %v1591_v25  ;;  %v1641_v34 = vadd.f32 %v1640_v32, %v1639_v26  ;;  %vm950_vm6 = vcmp.ge.f32.partialorder %v918_v29, 0.0  ;;  %v982_v35 = vmul.f32 0.1, %v918_v29 }
 0x134   : > { %vm966_vm7 = vcmp.ge.f32.partialorder %v934_v30, 0.0  ;;  %v998_v36 = vmul.f32 0.1, %v934_v30  ;;  %v1594_v37 = vpop.f32.mrf.mxu0  ;;  %v1642_v38 = vpop.f32.mrf.mxu1 }
 0x135   : > { %v919_v39 = vadd.f32 %v1593_v33, %v2166_v51  ;;  %v935_v40 = vadd.f32 %v1641_v34, %v2166_v51  ;;  %v1014_v43 = vsel %vm950_vm6, %v918_v29, %v982_v35 }
 0x136   : > { %v1030_v44 = vsel %vm966_vm7, %v934_v30, %v998_v36  ;;  %v1595_v45 = vpop.f32.mrf.mxu0  ;;  %v1643_v46 = vpop.f32.mrf.mxu1  ;;  %v1476_v47 = vpack.c.bf16 %v1014_v43, %v1013_v41 }
 0x137   : > { %v1516_v48 = vpack.c.bf16 %v1030_v44, %v1029_v42  ;;  %v1596_v49 = vadd.f32 %v1595_v45, %v1594_v37  ;;  %v1644_v50 = vadd.f32 %v1643_v46, %v1642_v38  ;;  %v983_v54 = vmul.f32 0.1, %v919_v39 }
 0x138   : > { %v1597_v52 = vpop.f32.mrf.mxu0  ;;  %v1645_v53 = vpop.f32.mrf.mxu1  ;;  %1548 = vst [vmem:[%s2175_s29 + $0x8] sm:$0xff] %v1476_v47   ;;  %v999_v55 = vmul.f32 0.1, %v935_v40  ;;  %vm951_vm8 = vcmp.ge.f32.partialorder %v919_v39, 0.0  ;;  %vm967_vm9 = vcmp.ge.f32.partialorder %v935_v40, 0.0 }
 0x139   : > { %1556 = vst [vmem:[%s2175_s29 + $0x48] sm:$0xff] %v1516_v48   ;;  %v920_v56 = vadd.f32 %v1596_v49, %v2166_v51  ;;  %v936_v57 = vadd.f32 %v1644_v50, %v2166_v51  ;;  %v1015_v2 = vsel %vm951_vm8, %v919_v39, %v983_v54 }
 0x13a   : > { %v1598_v58 = vpop.f32.mrf.mxu0  ;;  %v1646_v59 = vpop.f32.mrf.mxu1  ;;  %v1031_v3 = vsel %vm967_vm9, %v935_v40, %v999_v55 }
 0x13b   : > { %v1599_v60 = vadd.f32 %v1598_v58, %v1597_v52  ;;  %v1647_v61 = vadd.f32 %v1646_v59, %v1645_v53  ;;  %vm952_vm10 = vcmp.ge.f32.partialorder %v920_v56, 0.0  ;;  %v984_v62 = vmul.f32 0.1, %v920_v56 }
 0x13c   : > { %vm968_vm11 = vcmp.ge.f32.partialorder %v936_v57, 0.0  ;;  %v1000_v63 = vmul.f32 0.1, %v936_v57  ;;  %v1600_v0 = vpop.f32.mrf.mxu0  ;;  %v1648_v1 = vpop.f32.mrf.mxu1 }
 0x13d   : > { %v1016_v4 = vsel %vm952_vm10, %v920_v56, %v984_v62  ;;  %v921_v6 = vadd.f32 %v1599_v60, %v2166_v51  ;;  %v937_v7 = vadd.f32 %v1647_v61, %v2166_v51 }
 0x13e   : > { %v1032_v5 = vsel %vm968_vm11, %v936_v57, %v1000_v63  ;;  %v1601_v8 = vpop.f32.mrf.mxu0  ;;  %v1649_v9 = vpop.f32.mrf.mxu1  ;;  %v1481_v10 = vpack.c.bf16 %v1016_v4, %v1015_v2 }
 0x13f   : > { %v1521_v11 = vpack.c.bf16 %v1032_v5, %v1031_v3  ;;  %v1602_v12 = vadd.f32 %v1601_v8, %v1600_v0  ;;  %v1650_v13 = vadd.f32 %v1649_v9, %v1648_v1  ;;  %v985_v16 = vmul.f32 0.1, %v921_v6 }
 0x140   : > { %v1603_v14 = vpop.f32.mrf.mxu0  ;;  %v1651_v15 = vpop.f32.mrf.mxu1  ;;  %1549 = vst [vmem:[%s2175_s29 + $0x10] sm:$0xff] %v1481_v10   ;;  %v1001_v17 = vmul.f32 0.1, %v937_v7  ;;  %vm953_vm12 = vcmp.ge.f32.partialorder %v921_v6, 0.0  ;;  %vm969_vm13 = vcmp.ge.f32.partialorder %v937_v7, 0.0 }
 0x141   : > { %1557 = vst [vmem:[%s2175_s29 + $0x50] sm:$0xff] %v1521_v11   ;;  %v922_v18 = vadd.f32 %v1602_v12, %v2166_v51  ;;  %v938_v19 = vadd.f32 %v1650_v13, %v2166_v51  ;;  %v1017_v30 = vsel %vm953_vm12, %v921_v6, %v985_v16 }
 0x142   : > { %v1604_v20 = vpop.f32.mrf.mxu0  ;;  %v1652_v21 = vpop.f32.mrf.mxu1  ;;  %v1033_v31 = vsel %vm969_vm13, %v937_v7, %v1001_v17 }
 0x143   : > { %v1605_v22 = vadd.f32 %v1604_v20, %v1603_v14  ;;  %v1653_v23 = vadd.f32 %v1652_v21, %v1651_v15  ;;  %vm954_vm14 = vcmp.ge.f32.partialorder %v922_v18, 0.0  ;;  %v986_v24 = vmul.f32 0.1, %v922_v18 }
 0x144   : > { %vm970_vm15 = vcmp.ge.f32.partialorder %v938_v19, 0.0  ;;  %v1002_v25 = vmul.f32 0.1, %v938_v19  ;;  %v1606_v26 = vpop.f32.mrf.mxu0  ;;  %v1654_v27 = vpop.f32.mrf.mxu1 }
 0x145   : > { %v923_v28 = vadd.f32 %v1605_v22, %v2166_v51  ;;  %v939_v29 = vadd.f32 %v1653_v23, %v2166_v51  ;;  %v1018_v32 = vsel %vm954_vm14, %v922_v18, %v986_v24 }
 0x146   : > { %v1034_v33 = vsel %vm970_vm15, %v938_v19, %v1002_v25  ;;  %v1607_v34 = vpop.f32.mrf.mxu0  ;;  %v1655_v35 = vpop.f32.mrf.mxu1  ;;  %v1486_v36 = vpack.c.bf16 %v1018_v32, %v1017_v30 }
 0x147   : > { %v1526_v37 = vpack.c.bf16 %v1034_v33, %v1033_v31  ;;  %v1608_v38 = vadd.f32 %v1607_v34, %v1606_v26  ;;  %v1656_v39 = vadd.f32 %v1655_v35, %v1654_v27  ;;  %v987_v42 = vmul.f32 0.1, %v923_v28 }
 0x148   : > { %v1609_v40 = vpop.f32.mrf.mxu0  ;;  %v1657_v41 = vpop.f32.mrf.mxu1  ;;  %1550 = vst [vmem:[%s2175_s29 + $0x18] sm:$0xff] %v1486_v36   ;;  %v1003_v43 = vmul.f32 0.1, %v939_v29  ;;  %vm955_vm0 = vcmp.ge.f32.partialorder %v923_v28, 0.0  ;;  %vm971_vm1 = vcmp.ge.f32.partialorder %v939_v29, 0.0 }
 0x149   : > { %1558 = vst [vmem:[%s2175_s29 + $0x58] sm:$0xff] %v1526_v37   ;;  %v924_v44 = vadd.f32 %v1608_v38, %v2166_v51  ;;  %v940_v45 = vadd.f32 %v1656_v39, %v2166_v51  ;;  %v1019_v55 = vsel %vm955_vm0, %v923_v28, %v987_v42 }
 0x14a   : > { %v1610_v46 = vpop.f32.mrf.mxu0  ;;  %v1658_v47 = vpop.f32.mrf.mxu1  ;;  %v1035_v56 = vsel %vm971_vm1, %v939_v29, %v1003_v43 }
 0x14b   : > { %v1611_v48 = vadd.f32 %v1610_v46, %v1609_v40  ;;  %v1659_v49 = vadd.f32 %v1658_v47, %v1657_v41  ;;  %vm956_vm2 = vcmp.ge.f32.partialorder %v924_v44, 0.0  ;;  %v988_v50 = vmul.f32 0.1, %v924_v44 }
 0x14c   : > { %vm972_vm3 = vcmp.ge.f32.partialorder %v940_v45, 0.0  ;;  %v1004_v52 = vmul.f32 0.1, %v940_v45  ;;  %v1612_v53 = vpop.f32.mrf.mxu0  ;;  %v1660_v54 = vpop.f32.mrf.mxu1 }
 0x14d   : > { %v1020_v57 = vsel %vm956_vm2, %v924_v44, %v988_v50  ;;  %v925_v59 = vadd.f32 %v1611_v48, %v2166_v51  ;;  %v941_v60 = vadd.f32 %v1659_v49, %v2166_v51 }
 0x14e   : > { %v1036_v58 = vsel %vm972_vm3, %v940_v45, %v1004_v52  ;;  %v1613_v61 = vpop.f32.mrf.mxu0  ;;  %v1661_v62 = vpop.f32.mrf.mxu1  ;;  %v1491_v63 = vpack.c.bf16 %v1020_v57, %v1019_v55 }
 0x14f   : > { %v1531_v0 = vpack.c.bf16 %v1036_v58, %v1035_v56  ;;  %v1614_v1 = vadd.f32 %v1613_v61, %v1612_v53  ;;  %v1662_v2 = vadd.f32 %v1661_v62, %v1660_v54  ;;  %v989_v5 = vmul.f32 0.1, %v925_v59 }
 0x150   : > { %v1615_v3 = vpop.f32.mrf.mxu0  ;;  %v1663_v4 = vpop.f32.mrf.mxu1  ;;  %1551 = vst [vmem:[%s2175_s29 + $0x20] sm:$0xff] %v1491_v63   ;;  %v1005_v6 = vmul.f32 0.1, %v941_v60  ;;  %vm957_vm4 = vcmp.ge.f32.partialorder %v925_v59, 0.0  ;;  %vm973_vm5 = vcmp.ge.f32.partialorder %v941_v60, 0.0 }
 0x151   : > { %1559 = vst [vmem:[%s2175_s29 + $0x60] sm:$0xff] %v1531_v0   ;;  %v926_v7 = vadd.f32 %v1614_v1, %v2166_v51  ;;  %v942_v8 = vadd.f32 %v1662_v2, %v2166_v51  ;;  %v1021_v19 = vsel %vm957_vm4, %v925_v59, %v989_v5 }
 0x152   : > { %v1616_v9 = vpop.f32.mrf.mxu0  ;;  %v1664_v10 = vpop.f32.mrf.mxu1  ;;  %v1037_v20 = vsel %vm973_vm5, %v941_v60, %v1005_v6 }
 0x153   : > { %v1617_v11 = vadd.f32 %v1616_v9, %v1615_v3  ;;  %v1665_v12 = vadd.f32 %v1664_v10, %v1663_v4  ;;  %vm958_vm6 = vcmp.ge.f32.partialorder %v926_v7, 0.0  ;;  %v990_v13 = vmul.f32 0.1, %v926_v7 }
 0x154   : > { %vm974_vm7 = vcmp.ge.f32.partialorder %v942_v8, 0.0  ;;  %v1006_v14 = vmul.f32 0.1, %v942_v8  ;;  %v1618_v15 = vpop.f32.mrf.mxu0  ;;  %v1666_v16 = vpop.f32.mrf.mxu1 }
 0x155   : > { %v927_v17 = vadd.f32 %v1617_v11, %v2166_v51  ;;  %v943_v18 = vadd.f32 %v1665_v12, %v2166_v51  ;;  %v1022_v21 = vsel %vm958_vm6, %v926_v7, %v990_v13 }
 0x156   : > { %v1038_v22 = vsel %vm974_vm7, %v942_v8, %v1006_v14  ;;  %v1619_v23 = vpop.f32.mrf.mxu0  ;;  %v1667_v24 = vpop.f32.mrf.mxu1  ;;  %v1496_v25 = vpack.c.bf16 %v1022_v21, %v1021_v19 }
 0x157   : > { %v1536_v26 = vpack.c.bf16 %v1038_v22, %v1037_v20  ;;  %v1620_v27 = vadd.f32 %v1619_v23, %v1618_v15  ;;  %v1668_v28 = vadd.f32 %v1667_v24, %v1666_v16  ;;  %v991_v31 = vmul.f32 0.1, %v927_v17 }
 0x158   : > { %v1621_v29 = vpop.f32.mrf.mxu0  ;;  %v1669_v30 = vpop.f32.mrf.mxu1  ;;  %1552 = vst [vmem:[%s2175_s29 + $0x28] sm:$0xff] %v1496_v25   ;;  %v1007_v32 = vmul.f32 0.1, %v943_v18  ;;  %vm959_vm8 = vcmp.ge.f32.partialorder %v927_v17, 0.0  ;;  %vm975_vm9 = vcmp.ge.f32.partialorder %v943_v18, 0.0 }
 0x159   : > { %1560 = vst [vmem:[%s2175_s29 + $0x68] sm:$0xff] %v1536_v26   ;;  %v928_v33 = vadd.f32 %v1620_v27, %v2166_v51  ;;  %v944_v34 = vadd.f32 %v1668_v28, %v2166_v51  ;;  %v1023_v43 = vsel %vm959_vm8, %v927_v17, %v991_v31 }
 0x15a   : > { %v1622_v35 = vpop.f32.mrf.mxu0  ;;  %v1670_v36 = vpop.f32.mrf.mxu1  ;;  %v1039_v44 = vsel %vm975_vm9, %v943_v18, %v1007_v32 }
 0x15b   : > { %v1623_v37 = vadd.f32 %v1622_v35, %v1621_v29  ;;  %v1671_v38 = vadd.f32 %v1670_v36, %v1669_v30  ;;  %vm960_vm10 = vcmp.ge.f32.partialorder %v928_v33, 0.0  ;;  %v992_v39 = vmul.f32 0.1, %v928_v33 }
 0x15c   : > { %vm976_vm11 = vcmp.ge.f32.partialorder %v944_v34, 0.0  ;;  %v1008_v40 = vmul.f32 0.1, %v944_v34  ;;  %v1624_v41 = vpop.f32.mrf.mxu0  ;;  %v1672_v42 = vpop.f32.mrf.mxu1 }
 0x15d   : > { %v1024_v45 = vsel %vm960_vm10, %v928_v33, %v992_v39  ;;  %v929_v47 = vadd.f32 %v1623_v37, %v2166_v51  ;;  %v945_v48 = vadd.f32 %v1671_v38, %v2166_v51 }
 0x15e   : > { %v1040_v46 = vsel %vm976_vm11, %v944_v34, %v1008_v40  ;;  %v1625_v49 = vpop.f32.mrf.mxu0  ;;  %v1673_v50 = vpop.f32.mrf.mxu1  ;;  %v1501_v52 = vpack.c.bf16 %v1024_v45, %v1023_v43 }
 0x15f   : > { %v1541_v53 = vpack.c.bf16 %v1040_v46, %v1039_v44  ;;  %v1626_v54 = vadd.f32 %v1625_v49, %v1624_v41  ;;  %v1674_v55 = vadd.f32 %v1673_v50, %v1672_v42  ;;  %v993_v56 = vmul.f32 0.1, %v929_v47 }
 0x160   : > { %1553 = vst [vmem:[%s2175_s29 + $0x30] sm:$0xff] %v1501_v52   ;;  %v1009_v57 = vmul.f32 0.1, %v945_v48  ;;  %vm961_vm12 = vcmp.ge.f32.partialorder %v929_v47, 0.0  ;;  %vm977_vm13 = vcmp.ge.f32.partialorder %v945_v48, 0.0 }
 0x161   : > { %1561 = vst [vmem:[%s2175_s29 + $0x70] sm:$0xff] %v1541_v53   ;;  %v930_v58 = vadd.f32 %v1626_v54, %v2166_v51  ;;  %v946_v59 = vadd.f32 %v1674_v55, %v2166_v51  ;;  %v1025_v62 = vsel %vm961_vm12, %v929_v47, %v993_v56 }
 0x162   : > { %v1041_v63 = vsel %vm977_vm13, %v945_v48, %v1009_v57 }
 0x163   : > { %vm962_vm14 = vcmp.ge.f32.partialorder %v930_v58, 0.0  ;;  %v994_v60 = vmul.f32 0.1, %v930_v58  ;;  %vm978_vm15 = vcmp.ge.f32.partialorder %v946_v59, 0.0  ;;  %v1010_v61 = vmul.f32 0.1, %v946_v59 }
 0x165   : > { %v1026_v0 = vsel %vm962_vm14, %v930_v58, %v994_v60  ;;  %v1042_v1 = vsel %vm978_vm15, %v946_v59, %v1010_v61 }
 0x166   : > { %v1506_v51 = vpack.c.bf16 %v1026_v0, %v1025_v62  ;;  %v1546_v2 = vpack.c.bf16 %v1042_v1, %v1041_v63 }
 0x168   : > { %1554 = vst [vmem:[%s2175_s29 + $0x38] sm:$0xff] %v1506_v51   ;;  %1562 = vst [vmem:[%s2175_s29 + $0x78] sm:$0xff] %v1546_v2  }
 0x169   : > { %1901 = shalt.err (!%p1898_p3)
}
 0x16a   : > { %s1902_s26 = scalar_lea.hbm %s2222_s7, 2048  ;;  %s1906_s20 = scalar_lea.hbm %s2276_s3, 16384 }
 0x16b   : > { %p1903_p5 = scmp.ne.s32.totalorder %s2222_s7, %s1902_s26  ;;  %p1907_p6 = scmp.lt.s32.totalorder %s2222_s7, %s2276_s3 }
 0x16c   : > { %p1908_p11 = scmp.lt.s32.totalorder %s1906_s20, %s1902_s26 }
 0x16d   : > { %p1904_p7 = pnand %p1903_p5, %p2287_p4 }
 0x16e   : > { %p1909_p10 = por %p1908_p11, %p1907_p6 }
 0x16f   : > { %p1905_p9 = pneg %p1904_p7 }
 0x171   : > { %p1910_p1 = pnand %p1909_p10, %p1905_p9 }
 0x173   : > { %1913 = shalt.err (!%p1910_p1)
}
 0x174   : > { %s1981_s29 = smov 64   ;;  %s1982_s4 = smov 4  }
 0x175   : > { %1697 = dma.vmem_to_hbm [thread:$0]  (%p2287_p4), %s2224_s21, 2048, %s2222_s7, %s1204_s15, %s1981_s29, %s1981_s29, %s1982_s4  }
 0x176 PF: > { %p1714_p8 = scmp.ge.s32.totalorder %s1972_s17, 2  ;;  %s1233_s5 = sand.u32 1, %s1952_s12  }
 0x177   : > { %p2288_p12 = scmp.ne.s32.totalorder %s2281_s23, 0  ;;  %s1234_s6 = scalar_lea.sflag [#allocation5], %s1233_s5 }
 0x179   : > { %p1708_p13 = pnand %p1714_p8, %p2288_p12 }
 0x17b   : > { %p1709_p0 = pneg %p1708_p13 }
 0x17d   : > { %1947 = dma.done.wait (%p1709_p0), %s1234_s6, 2048  }
 0x17e   : > { %1949 = vsyncadd (%p1709_p0), %s1234_s6, 4294965248  ;;  %s20_s17 = sadd.s32 1, %s1972_s17   ;;  %s2289_s12 = smov %s1956_s13 }
 0x17f   : > { %p17_p2 = scmp.ge.s32.totalorder %s20_s17, 10   ;;  %s2290_s13 = smov %s1960_s14 }
 0x180   : > { %s2291_s14 = smov %s2098_s19  ;;  %s2292_s15 = smov %s1968_s16 }
 0x181   : > { %s2293_s16 = smov %s2295_s28  ;;  %19 = sbr.rel (!%p17_p2) target bundleno = 7 (0x7), region = 93 }
 0x186   :  { %1239 = vsyncpa [#allocation4], 1 }
 0x187   :  { %1241 = vsyncpa [#allocation4 + $0x1], 1 }
 0x188   :  { %1242 = vsyncpa [#allocation7], 1 }
 0x189   :  { %1243 = vsyncpa [#allocation5], 1 }
 0x18a   :  { %1245 = vsyncpa [#allocation5 + $0x1], 1 }

</bundles_post_ra>
